<compile_context>
chip_gen: v5e
topology: v5e:2x2
jax: 0.10.0
libtpu: 0.0.40
codegen_flags: <defaults>
</compile_context>

<pallas_src>
import functools

import jax
import jax.numpy as jnp
from jax.experimental import pallas as pl
from jax.experimental.pallas import tpu as pltpu

N_F = 4        # env.observation_space.shape[0] (e.g. CartPole -> 4)
HIDDEN = 20    # fc1 out features
OUT = 1        # fc2 out features (state value)

CHUNK = 256    # lanes per inner chunk: a (HIDDEN->24-sublane, 256) slab is 6 vregs, so
               # the 6 hoisted parameter slabs + h + temporaries (~60 vregs) stay inside
               # the 64-vreg file (512-wide chunks would need ~72 vregs for the
               # constants alone and spill).
UNROLL = 2     # static unroll of the chunk loop so the scheduler can interleave chunks
MAX_TB = 32768  # max batch-tile width (sweepable); 2 bufs x (8, 32768) f32 for the x and
                # out blocks + resident params ~ 4.5 MiB VMEM < 16 MiB v5e scoped default


def _round_up(x, m):
    return -(-x // m) * m


def _pick_tb(batch):
    """Pick the batch-tile width.

    Big tiles amortize the ~0.35us/grid-step overhead; >=2 (even) tiles keep both
    v7x TensorCores busy; tb must be a multiple of CHUNK*UNROLL so the in-kernel
    chunk loop divides evenly.
    """
    tiles = max(2, -(-batch // MAX_TB))
    if tiles % 2:
        tiles += 1
    tb = _round_up(-(-batch // tiles), CHUNK * UNROLL)
    return max(CHUNK * UNROLL, int(tb))


def _pack_params(w1, b1, w2, b2):
    """One lane-pre-broadcast f32 slab: [w1 col0..colN_F-1 | b1 | w2 | b2], CHUNK wide each.

    Pre-broadcasting in the wrapper means the kernel never spends VALU/XLU ops
    re-broadcasting per-lane-constant weights per chunk (JAX does not CSE
    broadcast_in_dim), and a single BlockSpec replaces five tiny ones.
    """
    f32 = jnp.float32
    blocks = [jnp.broadcast_to(w1[:, k:k + 1].astype(f32), (HIDDEN, CHUNK))
              for k in range(N_F)]
    blocks.append(jnp.broadcast_to(b1.reshape(HIDDEN, 1).astype(f32), (HIDDEN, CHUNK)))
    blocks.append(jnp.broadcast_to(w2.reshape(OUT, HIDDEN).T.astype(f32), (HIDDEN, CHUNK)))
    blocks.append(jnp.broadcast_to(b2.reshape(1, 1).astype(f32), (HIDDEN, CHUNK)))
    return jnp.concatenate(blocks, axis=1)        # (HIDDEN, (N_F + 3) * CHUNK)


def critic_kernel(x_ref, p_ref, o_ref):
    # x_ref : (N_F, tb)                 one batch tile, features on sublanes
    # p_ref : (HIDDEN, (N_F+3)*CHUNK)   packed, lane-pre-broadcast params (resident)
    # o_ref : (OUT, tb)                 lane-dense output slab
    tb = x_ref.shape[-1]
    n_chunks = tb // CHUNK            # static
    n_outer = n_chunks // UNROLL      # static; tb is a multiple of CHUNK*UNROLL

    # Hoist the parameter slabs once per grid step; reused by every lane chunk.
    w1b = [p_ref[:, k * CHUNK:(k + 1) * CHUNK] for k in range(N_F)]     # (HIDDEN, CHUNK)
    b1b = p_ref[:, N_F * CHUNK:(N_F + 1) * CHUNK]                       # (HIDDEN, CHUNK)
    w2b = p_ref[:, (N_F + 1) * CHUNK:(N_F + 2) * CHUNK]                 # (HIDDEN, CHUNK)
    b2b = p_ref[0:1, (N_F + 2) * CHUNK:(N_F + 3) * CHUNK]               # (1, CHUNK)

    def outer(i, carry):
        for u in range(UNROLL):                       # short static unroll
            off = pl.multiple_of((i * UNROLL + u) * CHUNK, CHUNK)
            xc = x_ref[:, pl.ds(off, CHUNK)]          # (N_F, CHUNK): one vld group
            # fc1: h[j,:] = b1[j] + sum_k w1[j,k] * x[k,:]   (VPU, unrolled over N_F)
            h = b1b
            for k in range(N_F):
                # TODO(synk): a stride-0 load (x_ref[pl.ds(k, HIDDEN, stride=0), ...])
                # would do this sublane replication at vld time and shave ~10-20% of
                # the vector ops on the binding VALU slot.
                xk = jnp.broadcast_to(xc[k:k + 1, :], (HIDDEN, CHUNK))
                h = h + w1b[k] * xk
            h = jnp.maximum(h, 0.0)                   # ReLU on the VPU
            # fc2: elementwise mul + XLU sublane reduce (deliberately no MXU).
            v = jnp.sum(h * w2b, axis=0, keepdims=True) + b2b           # (1, CHUNK)
            o_ref[:, pl.ds(off, CHUNK)] = v.astype(o_ref.dtype)
        return carry

    jax.lax.fori_loop(0, n_outer, outer, 0)


@functools.partial(jax.jit, static_argnames=("tb",))
def _critic_forward(x, w1, b1, w2, b2, *, tb):
    B = x.shape[0]
    b_pad = _round_up(B, tb)

    # Batch -> lane axis; zero-pad the batch to a tile multiple (single fused op).
    x_t = jnp.zeros((N_F, b_pad), jnp.float32).at[:, :B].set(x.T.astype(jnp.float32))
    params = _pack_params(w1, b1, w2, b2)

    grid = (b_pad // tb,)
    v_t = pl.pallas_call(
        critic_kernel,
        out_shape=jax.ShapeDtypeStruct((OUT, b_pad), jnp.float32),
        grid_spec=pltpu.PrefetchScalarGridSpec(
            num_scalar_prefetch=0,
            grid=grid,
            in_specs=[
                # batch tile, double-buffered along the grid (DMA overlaps compute)
                pl.BlockSpec((N_F, tb), lambda i: (0, i)),
                # packed params: constant index_map -> DMA'd once, VMEM-resident
                pl.BlockSpec(params.shape, lambda i: (0, 0)),
            ],
            out_specs=pl.BlockSpec((OUT, tb), lambda i: (0, i)),
        ),
        compiler_params=pltpu.CompilerParams(
            dimension_semantics=("parallel",)),       # shard batch tiles across TCs (v7x)
    )(x_t, params)

    return v_t[:, :B].T                               # metadata-only transpose -> (B, OUT)


def critic_forward(x, w1, b1, w2, b2, tb=None):
    """critic_network.forward.

    x : (B, N_F) observations. Weights in PyTorch layout: w1 (HIDDEN, N_F),
    b1 (HIDDEN,), w2 (OUT, HIDDEN), b2 (OUT,). Returns (B, OUT) f32 values.
    """
    if tb is None:
        tb = _pick_tb(x.shape[0])
    return _critic_forward(x, w1, b1, w2, b2, tb=int(tb))


def init_params(key):
    # Mirrors critic_network.initialize_weights():
    #   weights ~ Normal(0, 0.1), biases = 0.1 (PyTorch (out, in) layout)
    k1, k2 = jax.random.split(key)
    w1 = 0.1 * jax.random.normal(k1, (HIDDEN, N_F), dtype=jnp.float32)
    b1 = jnp.full((HIDDEN,), 0.1, dtype=jnp.float32)
    w2 = 0.1 * jax.random.normal(k2, (OUT, HIDDEN), dtype=jnp.float32)
    b2 = jnp.full((OUT,), 0.1, dtype=jnp.float32)
    return w1, b1, w2, b2


if __name__ == "__main__":
    key = jax.random.PRNGKey(0)
    k_x, k_p = jax.random.split(key)
    w1, b1, w2, b2 = init_params(k_p)

    def reference(x):
        # Plain-JAX reference of the PyTorch forward pass.
        return jnp.maximum(x @ w1.T + b1, 0.0) @ w2.T + b2

    # Batches deliberately not multiples of 128 to exercise pad-to-tile / slice-back;
    # the second size exercises the multi-chunk inner loop and a 2-tile parallel grid.
    # TODO(synk): optional bf16 compute (v6e/v7x) was left out to preserve the 1e-5 check.
    for B in (1000, 5000):
        x = jax.random.normal(jax.random.fold_in(k_x, B), (B, N_F), dtype=jnp.float32)
        v = critic_forward(x, w1, b1, w2, b2)
        jax.block_until_ready(v)
        assert v.shape == (B, OUT)
        err = float(jnp.max(jnp.abs(v - reference(x))))
        assert err < 1e-5, f"B={B} max abs err {err}"

    print("KERNEL_OK")
</pallas_src>

<mosaic_0001>
module attributes {stable_mosaic.version = 11 : i64} {
  func.func @critic_kernel(%arg0: i32, %arg1: memref<4x512xf32, #tpu.memory_space<vmem>>, %arg2: memref<20x1792xf32, #tpu.memory_space<vmem>>, %arg3: memref<1x512xf32, #tpu.memory_space<vmem>>) attributes {dimension_semantics = [#tpu.dimension_semantics<parallel>], iteration_bounds = array<i64: 2>, scalar_prefetch = 0 : i64, scratch_operands = 0 : i64, tpu.core_type = #tpu.core_type<tc>, window_params = [{transform_indices = @transform_0, window_bounds = array<i64: 4, 512>}, {pipeline_mode = #tpu.pipeline_mode<synchronous>, transform_indices = @transform_1, window_bounds = array<i64: 20, 1792>}, {transform_indices = @transform_2, window_bounds = array<i64: 1, 512>}]} {
    %c0 = arith.constant 0 : index
    %c0_0 = arith.constant 0 : index
    %0 = vector.load %arg2[%c0, %c0_0] : memref<20x1792xf32, #tpu.memory_space<vmem>>, vector<20x256xf32>
    %c0_1 = arith.constant 0 : index
    %c256 = arith.constant 256 : index
    %1 = vector.load %arg2[%c0_1, %c256] : memref<20x1792xf32, #tpu.memory_space<vmem>>, vector<20x256xf32>
    %c0_2 = arith.constant 0 : index
    %c512 = arith.constant 512 : index
    %2 = vector.load %arg2[%c0_2, %c512] : memref<20x1792xf32, #tpu.memory_space<vmem>>, vector<20x256xf32>
    %c0_3 = arith.constant 0 : index
    %c768 = arith.constant 768 : index
    %3 = vector.load %arg2[%c0_3, %c768] : memref<20x1792xf32, #tpu.memory_space<vmem>>, vector<20x256xf32>
    %c0_4 = arith.constant 0 : index
    %c1024 = arith.constant 1024 : index
    %4 = vector.load %arg2[%c0_4, %c1024] : memref<20x1792xf32, #tpu.memory_space<vmem>>, vector<20x256xf32>
    %c0_5 = arith.constant 0 : index
    %c1280 = arith.constant 1280 : index
    %5 = vector.load %arg2[%c0_5, %c1280] : memref<20x1792xf32, #tpu.memory_space<vmem>>, vector<20x256xf32>
    %c0_6 = arith.constant 0 : index
    %c1536 = arith.constant 1536 : index
    %6 = vector.load %arg2[%c0_6, %c1536] : memref<20x1792xf32, #tpu.memory_space<vmem>>, vector<1x256xf32>
    %c0_i32 = arith.constant 0 : i32
    %c2_i32 = arith.constant 2 : i32
    %7 = arith.muli %c0_i32, %c2_i32 : i32
    %c0_i32_7 = arith.constant 0 : i32
    %8 = arith.addi %7, %c0_i32_7 : i32
    %c256_i32 = arith.constant 256 : i32
    %9 = arith.muli %8, %c256_i32 : i32
    %10 = tpu.assume_multiple %9, 256 : i32
    %c0_8 = arith.constant 0 : index
    %11 = arith.index_cast %10 : i32 to index
    %12 = vector.load %arg1[%c0_8, %11] : memref<4x512xf32, #tpu.memory_space<vmem>>, vector<4x256xf32>
    %13 = vector.extract_strided_slice %12 {offsets = [0, 0], sizes = [1, 256], strides = [1, 1]} : vector<4x256xf32> to vector<1x256xf32>
    %14 = vector.shape_cast %13 : vector<1x256xf32> to vector<1x256xf32>
    %15 = vector.broadcast %14 : vector<1x256xf32> to vector<20x256xf32>
    %16 = arith.mulf %0, %15 : vector<20x256xf32>
    %17 = arith.addf %4, %16 : vector<20x256xf32>
    %18 = vector.extract_strided_slice %12 {offsets = [1, 0], sizes = [1, 256], strides = [1, 1]} : vector<4x256xf32> to vector<1x256xf32>
    %19 = vector.shape_cast %18 : vector<1x256xf32> to vector<1x256xf32>
    %20 = vector.broadcast %19 : vector<1x256xf32> to vector<20x256xf32>
    %21 = arith.mulf %1, %20 : vector<20x256xf32>
    %22 = arith.addf %17, %21 : vector<20x256xf32>
    %23 = vector.extract_strided_slice %12 {offsets = [2, 0], sizes = [1, 256], strides = [1, 1]} : vector<4x256xf32> to vector<1x256xf32>
    %24 = vector.shape_cast %23 : vector<1x256xf32> to vector<1x256xf32>
    %25 = vector.broadcast %24 : vector<1x256xf32> to vector<20x256xf32>
    %26 = arith.mulf %2, %25 : vector<20x256xf32>
    %27 = arith.addf %22, %26 : vector<20x256xf32>
    %28 = vector.extract_strided_slice %12 {offsets = [3, 0], sizes = [1, 256], strides = [1, 1]} : vector<4x256xf32> to vector<1x256xf32>
    %29 = vector.shape_cast %28 : vector<1x256xf32> to vector<1x256xf32>
    %30 = vector.broadcast %29 : vector<1x256xf32> to vector<20x256xf32>
    %31 = arith.mulf %3, %30 : vector<20x256xf32>
    %32 = arith.addf %27, %31 : vector<20x256xf32>
    %cst = arith.constant 0.000000e+00 : f32
    %33 = vector.broadcast %cst : f32 to vector<20x256xf32>
    %34 = arith.maximumf %32, %33 : vector<20x256xf32>
    %35 = arith.mulf %34, %5 : vector<20x256xf32>
    %cst_9 = arith.constant dense<0.000000e+00> : vector<256xf32>
    %36 = vector.multi_reduction <add>, %35, %cst_9 [0] : vector<20x256xf32> to vector<256xf32>
    %37 = vector.shape_cast %36 : vector<256xf32> to vector<1x256xf32>
    %38 = arith.addf %37, %6 : vector<1x256xf32>
    %c0_10 = arith.constant 0 : index
    %39 = arith.index_cast %10 : i32 to index
    %40 = vector.load %arg3[%c0_10, %39] : memref<1x512xf32, #tpu.memory_space<vmem>>, vector<1x256xf32>
    tpu.vector_store %arg3[%c0_10, %39], %38 {strides = array<i32>} : memref<1x512xf32, #tpu.memory_space<vmem>>, vector<1x256xf32>,
    %c2_i32_11 = arith.constant 2 : i32
    %41 = arith.muli %c0_i32, %c2_i32_11 : i32
    %c1_i32 = arith.constant 1 : i32
    %42 = arith.addi %41, %c1_i32 : i32
    %c256_i32_12 = arith.constant 256 : i32
    %43 = arith.muli %42, %c256_i32_12 : i32
    %44 = tpu.assume_multiple %43, 256 : i32
    %c0_13 = arith.constant 0 : index
    %45 = arith.index_cast %44 : i32 to index
    %46 = vector.load %arg1[%c0_13, %45] : memref<4x512xf32, #tpu.memory_space<vmem>>, vector<4x256xf32>
    %47 = vector.extract_strided_slice %46 {offsets = [0, 0], sizes = [1, 256], strides = [1, 1]} : vector<4x256xf32> to vector<1x256xf32>
    %48 = vector.shape_cast %47 : vector<1x256xf32> to vector<1x256xf32>
    %49 = vector.broadcast %48 : vector<1x256xf32> to vector<20x256xf32>
    %50 = arith.mulf %0, %49 : vector<20x256xf32>
    %51 = arith.addf %4, %50 : vector<20x256xf32>
    %52 = vector.extract_strided_slice %46 {offsets = [1, 0], sizes = [1, 256], strides = [1, 1]} : vector<4x256xf32> to vector<1x256xf32>
    %53 = vector.shape_cast %52 : vector<1x256xf32> to vector<1x256xf32>
    %54 = vector.broadcast %53 : vector<1x256xf32> to vector<20x256xf32>
    %55 = arith.mulf %1, %54 : vector<20x256xf32>
    %56 = arith.addf %51, %55 : vector<20x256xf32>
    %57 = vector.extract_strided_slice %46 {offsets = [2, 0], sizes = [1, 256], strides = [1, 1]} : vector<4x256xf32> to vector<1x256xf32>
    %58 = vector.shape_cast %57 : vector<1x256xf32> to vector<1x256xf32>
    %59 = vector.broadcast %58 : vector<1x256xf32> to vector<20x256xf32>
    %60 = arith.mulf %2, %59 : vector<20x256xf32>
    %61 = arith.addf %56, %60 : vector<20x256xf32>
    %62 = vector.extract_strided_slice %46 {offsets = [3, 0], sizes = [1, 256], strides = [1, 1]} : vector<4x256xf32> to vector<1x256xf32>
    %63 = vector.shape_cast %62 : vector<1x256xf32> to vector<1x256xf32>
    %64 = vector.broadcast %63 : vector<1x256xf32> to vector<20x256xf32>
    %65 = arith.mulf %3, %64 : vector<20x256xf32>
    %66 = arith.addf %61, %65 : vector<20x256xf32>
    %cst_14 = arith.constant 0.000000e+00 : f32
    %67 = vector.broadcast %cst_14 : f32 to vector<20x256xf32>
    %68 = arith.maximumf %66, %67 : vector<20x256xf32>
    %69 = arith.mulf %68, %5 : vector<20x256xf32>
    %cst_15 = arith.constant dense<0.000000e+00> : vector<256xf32>
    %70 = vector.multi_reduction <add>, %69, %cst_15 [0] : vector<20x256xf32> to vector<256xf32>
    %71 = vector.shape_cast %70 : vector<256xf32> to vector<1x256xf32>
    %72 = arith.addf %71, %6 : vector<1x256xf32>
    %c0_16 = arith.constant 0 : index
    %73 = arith.index_cast %44 : i32 to index
    %74 = vector.load %arg3[%c0_16, %73] : memref<1x512xf32, #tpu.memory_space<vmem>>, vector<1x256xf32>
    tpu.vector_store %arg3[%c0_16, %73], %72 {strides = array<i32>} : memref<1x512xf32, #tpu.memory_space<vmem>>, vector<1x256xf32>,
    %c1_i32_17 = arith.constant 1 : i32
    return
  }
  func.func @transform_0(%arg0: i32) -> (i32, i32) {
    %c0_i32 = arith.constant 0 : i32
    %c0_i32_0 = arith.constant 0 : i32
    return %c0_i32, %arg0 : i32, i32
  }
  func.func @transform_1(%arg0: i32) -> (i32, i32) {
    %c0_i32 = arith.constant 0 : i32
    %c0_i32_0 = arith.constant 0 : i32
    %c0_i32_1 = arith.constant 0 : i32
    return %c0_i32, %c0_i32_0 : i32, i32
  }
  func.func @transform_2(%arg0: i32) -> (i32, i32) {
    %c0_i32 = arith.constant 0 : i32
    %c0_i32_0 = arith.constant 0 : i32
    return %c0_i32, %arg0 : i32, i32
  }
}

</mosaic_0001>

<bundles_post_ra>
// kernel: _critic_forward.1
= control target key start
LH: loop header
LB: loop body
LE: loop exit
PB: predicated region body
PF: predicated region fallthrough
CT: control target
= control target key end

     0   :  { %s514_s9 = smov 0   ;;  %s834_s0 = inlined_call_operand.vmem [shape: f32[4,1024], index: 0, kind: input, shape index: {}]   ;;  %s835_s1 = inlined_call_operand.vmem [shape: f32[20,1792], index: 1, kind: input, shape index: {}]   ;;  %s836_s2 = inlined_call_operand.vmem [shape: f32[1,1024], index: 2, kind: output, shape index: {}]  }
   0x1 LB: > { %s470_s10 = sadd.s32 4294967295, %s497_s9   ;;  %p474_p0 = scmp.ge.s32.totalorder %s497_s9, 1  ;;  %s497_s9 = sphi %s514_s9, %s12_s9  }
   0x2   : > { %p113_p1 = scmp.lt.s32.totalorder %s497_s9, 3 }
   0x4   : > { %p114_p2 = pnand %p474_p0, %p113_p1 }
   0x5   : > { %s475_s11 = sshll.u32 (!%p114_p2), %s470_s10, 2 }
   0x6   : > { %117 = sbr.rel (%p114_p2) target bundleno = 83 (0x53), region = 28  ;;  %p135_p3 = scmp.lt.s32.totalorder (!%p114_p2), %s475_s11, 7 }
   0xb   : > { %s840_s11 = smov (!%p135_p3, %s475_s11), 7  ;;  %v533_v0 = vld [vmem:[%s835_s1] sm:$0xff]  ;;  %v538_v1 = vld [vmem:[%s835_s1 + $0x8] sm:$0xff]  ;;  %v543_v2 = vld [vmem:[%s835_s1 + $0x70] sm:$0xff]  ;;  %vm270_vm0 = vcmask 1043456   ;;  %vm298_vm1 = vcmask 1040384  }
   0xc   : > { %s476_s12 = sshll.u32 %s840_s11, 2  ;;  %v548_v3 = vld [vmem:[%s835_s1 + $0x78] sm:$0xff]  ;;  %v554_v5 = vld [vmem:[%s835_s1 + $0xe0] sm:$0xf]  ;;  %v559_v6 = vld [vmem:[%s835_s1 + $0xe8] sm:$0xf]  ;;  %s799_s16 = scalar_lea.vmem %s836_s2, %s840_s11 }
   0xd   : > { %s528_s15 = scalar_lea.vmem %s834_s0, %s476_s12  ;;  %v564_v11 = vld [vmem:[%s835_s1 + $0x10] sm:$0xff]  ;;  %v569_v12 = vld [vmem:[%s835_s1 + $0x18] sm:$0xff]  ;;  %v574_v17 = vld [vmem:[%s835_s1 + $0x80] sm:$0xff] }
   0xe   : > { %v183_v4 = vld [vmem:[%s528_s15] sm:$0xff]  ;;  %v584_v19 = vld [vmem:[%s835_s1 + $0x48] sm:$0xff]  ;;  %v589_v24 = vld [vmem:[%s835_s1 + $0xb0] sm:$0xff] }
   0xf   : > { %v185_v7 = vperm.slane %v183_v4, 0  ;;  %v186_v8 = vperm.slane %v183_v4, 4  ;;  %v203_v9 = vperm.slane %v183_v4, 1  ;;  %v204_v10 = vperm.slane %v183_v4, 5  ;;  %v579_v18 = vld [vmem:[%s835_s1 + $0x40] sm:$0xff]  ;;  %v594_v25 = vld [vmem:[%s835_s1 + $0xb8] sm:$0xff] }
  0x10   : > { %v221_v13 = vperm.slane %v183_v4, 2  ;;  %v222_v14 = vperm.slane %v183_v4, 6  ;;  %v239_v15 = vperm.slane %v183_v4, 3  ;;  %v240_v16 = vperm.slane %v183_v4, 7  ;;  %v599_v30 = vld [vmem:[%s835_s1 + $0x88] sm:$0xff]  ;;  %v632_v43 = vld [vmem:[%s835_s1 + $0x20] sm:$0xff] }
  0x11   : > { %v189_v20 = vperm.slane %v185_v7, 0  ;;  %v190_v21 = vperm.slane %v186_v8, 0  ;;  %v207_v22 = vperm.slane %v203_v9, 1  ;;  %v208_v23 = vperm.slane %v204_v10, 1  ;;  %v604_v31 = vld [vmem:[%s835_s1 + $0x120] sm:$0xf] }
  0x12   : > { %v225_v26 = vperm.slane %v221_v13, 2  ;;  %v226_v27 = vperm.slane %v222_v14, 2  ;;  %v243_v28 = vperm.slane %v239_v15, 3  ;;  %v244_v29 = vperm.slane %v240_v16, 3  ;;  %v609_v32 = vld [vmem:[%s835_s1 + $0x128] sm:$0xf] }
  0x13   : > { %v191_v33 = vmul.f32 %v189_v20, %v533_v0  ;;  %v192_v34 = vmul.f32 %v190_v21, %v538_v1  ;;  %v193_v35 = vmul.f32 %v189_v20, %v543_v2  ;;  %v194_v36 = vmul.f32 %v190_v21, %v548_v3  ;;  %v618_v37 = vld [vmem:[%s835_s1 + $0xf0] sm:$0xf]  ;;  %v623_v38 = vld [vmem:[%s835_s1 + $0xf8] sm:$0xf]  ;;  %v637_v44 = vld [vmem:[%s835_s1 + $0x28] sm:$0xff] }
  0x14   : > { %v195_v39 = vmul.f32 %v189_v20, %v554_v5  ;;  %v196_v40 = vmul.f32 %v190_v21, %v559_v6  ;;  %v209_v41 = vmul.f32 %v207_v22, %v564_v11  ;;  %v210_v42 = vmul.f32 %v208_v23, %v569_v12  ;;  %v646_v49 = vld [vmem:[%s835_s1 + $0x90] sm:$0xff]  ;;  %v651_v50 = vld [vmem:[%s835_s1 + $0x98] sm:$0xff]  ;;  %v660_v55 = vld [vmem:[%s835_s1 + $0x100] sm:$0xf] }
  0x15   : > { %v197_v45 = vadd.f32 %v191_v33, %v579_v18  ;;  %v198_v46 = vadd.f32 %v192_v34, %v584_v19  ;;  %v199_v47 = vadd.f32 %v193_v35, %v589_v24  ;;  %v200_v48 = vadd.f32 %v194_v36, %v594_v25  ;;  %v665_v56 = vld [vmem:[%s835_s1 + $0x108] sm:$0xf]  ;;  %v672_v61 = vld [vmem:[%s835_s1 + $0x30] sm:$0xff]  ;;  %v677_v62 = vld [vmem:[%s835_s1 + $0x38] sm:$0xff] }
  0x16   : > { %v201_v51 = vadd.f32 %v195_v39, %v604_v31  ;;  %v202_v52 = vadd.f32 %v196_v40, %v609_v32  ;;  %v211_v53 = vmul.f32 %v207_v22, %v574_v17  ;;  %v212_v54 = vmul.f32 %v208_v23, %v599_v30  ;;  %v684_v9 = vld [vmem:[%s835_s1 + $0xa0] sm:$0xff]  ;;  %v689_v10 = vld [vmem:[%s835_s1 + $0xa8] sm:$0xff]  ;;  %v696_v20 = vld [vmem:[%s835_s1 + $0x110] sm:$0xf] }
  0x17   : > { %v213_v57 = vmul.f32 %v207_v22, %v618_v37  ;;  %v214_v58 = vmul.f32 %v208_v23, %v623_v38  ;;  %v215_v59 = vadd.f32 %v209_v41, %v197_v45  ;;  %v216_v60 = vadd.f32 %v210_v42, %v198_v46  ;;  %v701_v21 = vld [vmem:[%s835_s1 + $0x118] sm:$0xf] }
  0x18   : > { %v217_v63 = vadd.f32 %v211_v53, %v199_v47  ;;  %v218_v4 = vadd.f32 %v212_v54, %v200_v48  ;;  %v227_v7 = vmul.f32 %v225_v26, %v632_v43  ;;  %v228_v8 = vmul.f32 %v226_v27, %v637_v44  ;;  %v724_v53 = vld [vmem:[%s835_s1 + $0xc0] sm:$0xff]  ;;  %v729_v54 = vld [vmem:[%s835_s1 + $0x130] sm:$0xf] }
  0x19   : > { %v219_v13 = vadd.f32 %v213_v57, %v201_v51  ;;  %v220_v14 = vadd.f32 %v214_v58, %v202_v52  ;;  %v229_v15 = vmul.f32 %v225_v26, %v646_v49  ;;  %v230_v16 = vmul.f32 %v226_v27, %v651_v50  ;;  %v719_v52 = vld [vmem:[%s835_s1 + $0x58] sm:$0xff]  ;;  %v734_v57 = vld [vmem:[%s835_s1 + $0xc8] sm:$0xff] }
  0x1a   : > { %v231_v22 = vmul.f32 %v225_v26, %v660_v55  ;;  %v232_v23 = vmul.f32 %v226_v27, %v665_v56  ;;  %v233_v33 = vadd.f32 %v227_v7, %v215_v59  ;;  %v234_v34 = vadd.f32 %v228_v8, %v216_v60  ;;  %v712_v26 = vld [vmem:[%s835_s1 + $0x50] sm:$0xff]  ;;  %v739_v58 = vld [vmem:[%s835_s1 + $0x60] ss:$8 sm:$0x3]  ;;  %v744_v7 = vld [vmem:[%s835_s1 + $0x138] sm:$0xf] }
  0x1b   : > { %v235_v35 = vadd.f32 %v229_v15, %v217_v63  ;;  %v236_v36 = vadd.f32 %v230_v16, %v218_v4  ;;  %v245_v39 = vmul.f32 %v243_v28, %v672_v61  ;;  %v246_v40 = vmul.f32 %v244_v29, %v677_v62  ;;  %v748_v15 = vld [vmem:[%s528_s15 + $0x8] sm:$0xff] }
  0x1c   : > { %v237_v41 = vadd.f32 %v231_v22, %v219_v13  ;;  %v238_v42 = vadd.f32 %v232_v23, %v220_v14  ;;  %v247_v45 = vmul.f32 %v243_v28, %v684_v9  ;;  %v248_v46 = vmul.f32 %v244_v29, %v689_v10 }
  0x1d   : > { %v249_v27 = vmul.f32 %v243_v28, %v696_v20  ;;  %v250_v47 = vmul.f32 %v244_v29, %v701_v21  ;;  %v251_v48 = vadd.f32 %v245_v39, %v233_v33  ;;  %v252_v51 = vadd.f32 %v246_v40, %v234_v34 }
  0x1e   : > { %v253_v28 = vadd.f32 %v247_v45, %v235_v35  ;;  %v254_v29 = vadd.f32 %v248_v46, %v236_v36  ;;  %v289_v14 = vperm.slane %v739_v58, 0  ;;  %v290_v36 = vperm.slane %v739_v58, 1 }
  0x1f   : > { %v255_v59 = vadd.f32 %v249_v27, %v237_v41  ;;  %v256_v60 = vadd.f32 %v250_v47, %v238_v42  ;;  %v257_v63 = vmax.f32 %v251_v48, 0.0  ;;  %v258_v4 = vmax.f32 %v252_v51, 0.0 }
  0x20   : > { %v259_v8 = vmax.f32 %v253_v28, 0.0  ;;  %v260_v13 = vmax.f32 %v254_v29, 0.0  ;;  %v309_v39 = vperm.slane %v748_v15, 0  ;;  %v310_v42 = vperm.slane %v748_v15, 4 }
  0x21   : > { %v261_v16 = vmax.f32 %v255_v59, 0.0  ;;  %v262_v22 = vmax.f32 %v256_v60, 0.0  ;;  %v263_v23 = vmul.f32 %v257_v63, %v712_v26  ;;  %v264_v33 = vmul.f32 %v258_v4, %v719_v52 }
  0x22   : > { %v265_v34 = vmul.f32 %v259_v8, %v724_v53  ;;  %v266_v35 = vmul.f32 %v260_v13, %v734_v57  ;;  %v327_v45 = vperm.slane %v748_v15, 1  ;;  %v313_v47 = vperm.slane %v309_v39, 0 }
  0x23   : > { %v267_v40 = vmul.f32 %v261_v16, %v729_v54  ;;  %v268_v41 = vmul.f32 %v262_v22, %v744_v7  ;;  %v328_v48 = vperm.slane %v748_v15, 5  ;;  %v314_v29 = vperm.slane %v310_v42, 0 }
  0x24   : > { %v269_v46 = vadd.f32 %v265_v34, %v263_v23  ;;  %v279_v27 = vadd.f32 %v266_v35, %v264_v33  ;;  %v331_v59 = vperm.slane %v327_v45, 1  ;;  %v315_v4 = vmul.f32 %v313_v47, %v533_v0 }
  0x25   : > { %v271_v51 = vsel %vm270_vm0, %v267_v40, 0.0  ;;  %v280_v28 = vsel %vm270_vm0, %v268_v41, 0.0  ;;  %v317_v8 = vmul.f32 %v313_v47, %v543_v2  ;;  %v316_v13 = vmul.f32 %v314_v29, %v538_v1 }
  0x26   : > { %v272_v60 = vadd.f32 %v271_v51, %v269_v46  ;;  %v281_v63 = vadd.f32 %v280_v28, %v279_v27  ;;  %v318_v16 = vmul.f32 %v314_v29, %v548_v3  ;;  %v319_v22 = vmul.f32 %v313_v47, %v554_v5 }
  0x27   : > { %v320_v23 = vmul.f32 %v314_v29, %v559_v6  ;;  %v321_v35 = vadd.f32 %v315_v4, %v579_v18  ;;  %v323_v39 = vadd.f32 %v317_v8, %v589_v24  ;;  %v322_v40 = vadd.f32 %v316_v13, %v584_v19 }
  0x28   : > { %v273_v33 = vrot.slane %v272_v60, 4  ;;  %v282_v34 = vrot.slane %v281_v63, 4  ;;  %v324_v0 = vadd.f32 %v318_v16, %v594_v25  ;;  %v325_v2 = vadd.f32 %v319_v22, %v604_v31 }
  0x29   : > { %v326_v1 = vadd.f32 %v320_v23, %v609_v32  ;;  %v332_v42 = vperm.slane %v328_v48, 1  ;;  %v333_v5 = vmul.f32 %v331_v59, %v564_v11  ;;  %v335_v6 = vmul.f32 %v331_v59, %v574_v17 }
  0x2a   : > { %v274_v41 = vadd.f32 %v273_v33, %v272_v60  ;;  %v283_v3 = vadd.f32 %v282_v34, %v281_v63  ;;  %v337_v45 = vmul.f32 %v331_v59, %v618_v37  ;;  %v345_v18 = vperm.slane %v748_v15, 2 }
  0x2b   : > { %v346_v24 = vperm.slane %v748_v15, 6  ;;  %v334_v25 = vmul.f32 %v332_v42, %v569_v12  ;;  %v336_v31 = vmul.f32 %v332_v42, %v599_v30  ;;  %v301_v32 = vlaneseq }
  0x2c   : > { %v275_v19 = vrot.slane %v274_v41, 2  ;;  %v284_v46 = vrot.slane %v283_v3, 2  ;;  %v338_v27 = vmul.f32 %v332_v42, %v623_v38  ;;  %v339_v47 = vadd.f32 %v333_v5, %v321_v35 }
  0x2d   : > { %v341_v48 = vadd.f32 %v335_v6, %v323_v39  ;;  %v340_v17 = vadd.f32 %v334_v25, %v322_v40  ;;  %v343_v28 = vadd.f32 %v337_v45, %v325_v2  ;;  %v342_v37 = vadd.f32 %v336_v31, %v324_v0 }
  0x2e   : > { %v276_v11 = vadd.f32 %v275_v19, %v274_v41  ;;  %v285_v51 = vadd.f32 %v284_v46, %v283_v3  ;;  %v344_v29 = vadd.f32 %v338_v27, %v326_v1  ;;  %v349_v59 = vperm.slane %v345_v18, 2 }
  0x2f   : > { %v350_v60 = vperm.slane %v346_v24, 2  ;;  %v363_v8 = vperm.slane %v748_v15, 3  ;;  %v364_v12 = vperm.slane %v748_v15, 7  ;;  %vm801_vm2 = vcmp.lt.s32.totalorder %v301_v32, 256 }
  0x30   : > { %v277_v63 = vrot.slane %v276_v11, 1  ;;  %v286_v4 = vrot.slane %v285_v51, 1  ;;  %v351_v30 = vmul.f32 %v349_v59, %v632_v43  ;;  %v353_v13 = vmul.f32 %v349_v59, %v646_v49 }
  0x31   : > { %v352_v38 = vmul.f32 %v350_v60, %v637_v44  ;;  %v354_v16 = vmul.f32 %v350_v60, %v651_v50  ;;  %v355_v33 = vmul.f32 %v349_v59, %v660_v55  ;;  %v356_v34 = vmul.f32 %v350_v60, %v665_v56 }
  0x32   : > { %v278_v22 = vadd.f32 %v277_v63, %v276_v11  ;;  %v287_v23 = vadd.f32 %v286_v4, %v285_v51  ;;  %v357_v15 = vadd.f32 %v351_v30, %v339_v47  ;;  %v359_v39 = vadd.f32 %v353_v13, %v341_v48 }
  0x33   : > { %v358_v44 = vadd.f32 %v352_v38, %v340_v17  ;;  %v360_v40 = vadd.f32 %v354_v16, %v342_v37  ;;  %v367_v49 = vperm.slane %v363_v8, 3  ;;  %v368_v0 = vperm.slane %v364_v12, 3 }
  0x34   : > { %v293_v35 = vadd.f32 %v289_v14, %v278_v22  ;;  %v294_v43 = vadd.f32 %v290_v36, %v287_v23  ;;  %v361_v56 = vadd.f32 %v355_v33, %v343_v28  ;;  %v362_v2 = vadd.f32 %v356_v34, %v344_v29 }
  0x35   : > { %v369_v1 = vmul.f32 %v367_v49, %v672_v61  ;;  %v370_v41 = vmul.f32 %v368_v0, %v677_v62  ;;  %v371_v3 = vmul.f32 %v367_v49, %v684_v9  ;;  %v372_v42 = vmul.f32 %v368_v0, %v689_v10 }
  0x36   : > { %v297_v50 = vrot.slane %v294_v43, 7  ;;  %v373_v6 = vmul.f32 %v367_v49, %v696_v20  ;;  %v374_v45 = vmul.f32 %v368_v0, %v701_v21 }
  0x37   : > { %v375_v18 = vadd.f32 %v369_v1, %v357_v15  ;;  %v376_v24 = vadd.f32 %v370_v41, %v358_v44  ;;  %v377_v19 = vadd.f32 %v371_v3, %v359_v39  ;;  %v378_v46 = vadd.f32 %v372_v42, %v360_v40 }
  0x38   : > { %v299_v5 = vsel %vm298_vm1, %v293_v35, %v297_v50  ;;  %v379_v61 = vadd.f32 %v373_v6, %v361_v56  ;;  %v380_v25 = vadd.f32 %v374_v45, %v362_v2 }
  0x39   : > { %305 = vst.msk [vmem:[%s799_s16] sm:$0x3] %vm801_vm2, %v299_v5  ;;  %v381_v62 = vmax.f32 %v375_v18, 0.0  ;;  %v382_v31 = vmax.f32 %v376_v24, 0.0  ;;  %v383_v9 = vmax.f32 %v377_v19, 0.0  ;;  %v384_v32 = vmax.f32 %v378_v46, 0.0 }
  0x3a   : > { %v385_v10 = vmax.f32 %v379_v61, 0.0  ;;  %v386_v27 = vmax.f32 %v380_v25, 0.0 }
  0x3b   : > { %v387_v47 = vmul.f32 %v381_v62, %v712_v26  ;;  %v388_v20 = vmul.f32 %v382_v31, %v719_v52  ;;  %v389_v21 = vmul.f32 %v383_v9, %v724_v53  ;;  %v390_v48 = vmul.f32 %v384_v32, %v734_v57 }
  0x3c   : > { %v391_v11 = vmul.f32 %v385_v10, %v729_v54  ;;  %v392_v51 = vmul.f32 %v386_v27, %v744_v7 }
  0x3d   : > { %v393_v17 = vadd.f32 %v389_v21, %v387_v47  ;;  %v402_v28 = vadd.f32 %v390_v48, %v388_v20 }
  0x3e   : > { %v394_v37 = vsel %vm270_vm0, %v391_v11, 0.0  ;;  %v403_v29 = vsel %vm270_vm0, %v392_v51, 0.0 }
  0x3f   : > { %v395_v59 = vadd.f32 %v394_v37, %v393_v17  ;;  %v404_v60 = vadd.f32 %v403_v29, %v402_v28 }
  0x41   : > { %v396_v63 = vrot.slane %v395_v59, 4  ;;  %v405_v26 = vrot.slane %v404_v60, 4 }
  0x43   : > { %v397_v52 = vadd.f32 %v396_v63, %v395_v59  ;;  %v406_v4 = vadd.f32 %v405_v26, %v404_v60 }
  0x45   : > { %v398_v53 = vrot.slane %v397_v52, 2  ;;  %v407_v8 = vrot.slane %v406_v4, 2 }
  0x47   : > { %v399_v57 = vadd.f32 %v398_v53, %v397_v52  ;;  %v408_v12 = vadd.f32 %v407_v8, %v406_v4 }
  0x49   : > { %v400_v54 = vrot.slane %v399_v57, 1  ;;  %v409_v30 = vrot.slane %v408_v12, 1 }
  0x4b   : > { %v401_v7 = vadd.f32 %v400_v54, %v399_v57  ;;  %v410_v38 = vadd.f32 %v409_v30, %v408_v12 }
  0x4d   : > { %v411_v13 = vadd.f32 %v401_v7, %v289_v14  ;;  %v412_v16 = vadd.f32 %v410_v38, %v290_v36 }
  0x4f   : > { %v415_v22 = vrot.slane %v412_v16, 7 }
  0x51   : > { %v416_v23 = vsel %vm298_vm1, %v411_v13, %v415_v22 }
  0x52   : > { %480 = vst.msk [vmem:[%s799_s16 + $0x2] sm:$0x3] %vm801_vm2, %v416_v23 }
  0x53 PF: > { %s12_s9 = sadd.s32 1, %s497_s9  }
  0x54   : > { %p9_p4 = scmp.ge.s32.totalorder %s12_s9, 4  }
  0x56   :  { %11 = sbr.rel (!%p9_p4) target bundleno = 1 (0x1), region = 61 }

</bundles_post_ra>
